<compile_context>
chip_gen: v7x
topology: tpu7x:2x2x1
jax: 0.10.0
libtpu: 0.0.40
codegen_flags: <defaults>
</compile_context>

<pallas_src>
import jax
import jax.numpy as jnp
from jax import lax
from jax.experimental import pallas as pl
from jax.experimental.pallas import tpu as pltpu

IN_F = 90        # real input features
HID = 50         # hidden width
OUT_F = 2        # (mean, sigma_raw)
PAD = 128        # lane-padded feature width
OUT_ROWS = 8     # sublane-padded output feature rows (only rows 0,1 used)
MAX_TB = 256     # max batch tile


def _round_up(n, m):
    return ((n + m - 1) // m) * m


def _dnn_kernel(x_ref, wh_ref, w6t_ref, bh_ref, b6_ref, o_ref, xpad_ref):
    # Lane-pad the input tile (TB, 90) -> (TB, 128) inside VMEM; lanes >= 90
    # are explicitly zeroed so the padded weight rows contribute nothing.
    xpad_ref[...] = jnp.zeros_like(xpad_ref)
    xpad_ref[:, :IN_F] = x_ref[...]
    h = xpad_ref[...].astype(jnp.bfloat16)            # (TB, 128) bf16

    # fc1..fc5: bf16 matmul, f32 accumulate, bias + ReLU (dropout = identity).
    for l in range(5):
        acc = jnp.dot(h, wh_ref[l], preferred_element_type=jnp.float32)
        h = jnp.maximum(acc + bh_ref[l:l + 1, :], 0.0).astype(jnp.bfloat16)

    # fc6 computed transposed: (8, 128) @ (TB, 128)^T -> lane-dense (8, TB).
    y_t = lax.dot_general(
        w6t_ref[...], h,
        dimension_numbers=(((1,), (1,)), ((), ())),
        preferred_element_type=jnp.float32)
    y_t = y_t + b6_ref[...]                            # (8, 1) broadcasts over lanes

    # softplus(sigma_raw) + 1e-6 on row 1 only; row 0 keeps the mean.
    sp = jnp.maximum(y_t, 0.0) + jnp.log1p(jnp.exp(-jnp.abs(y_t))) + 1e-6
    row = lax.broadcasted_iota(jnp.int32, y_t.shape, dimension=0)
    o_ref[...] = jnp.where(row == 1, sp, y_t)


def init_params(key):
    """Deterministic parameters; PyTorch-Linear-like uniform init, (in, out) layout."""
    dims = [(IN_F, HID), (HID, HID), (HID, HID), (HID, HID), (HID, HID), (HID, OUT_F)]
    params = []
    for (fan_in, fan_out) in dims:
        key, kw, kb = jax.random.split(key, 3)
        bound = 1.0 / jnp.sqrt(fan_in)
        w = jax.random.uniform(kw, (fan_in, fan_out), jnp.float32, -bound, bound)
        b = jax.random.uniform(kb, (fan_out,), jnp.float32, -bound, bound)
        params.append((w, b))
    return params


def prepare_params(params):
    """One-time pad/pack/cast of the 6 (w, b) pairs into kernel-ready arrays."""
    (w1, b1), (w2, b2), (w3, b3), (w4, b4), (w5, b5), (w6, b6) = params

    # fc1..fc5 weights packed into (5, 128, 128) bf16 (zero-padded).
    wh = jnp.zeros((5, PAD, PAD), jnp.bfloat16)
    for i, w in enumerate((w1, w2, w3, w4, w5)):
        wh = wh.at[i, :w.shape[0], :w.shape[1]].set(w.astype(jnp.bfloat16))

    # fc1..fc5 biases packed into (8, 128) f32, rows 0..4 used.
    bh = jnp.zeros((OUT_ROWS, PAD), jnp.float32)
    for i, b in enumerate((b1, b2, b3, b4, b5)):
        bh = bh.at[i, :b.shape[0]].set(b)

    # fc6 stored transposed (out, in) = (2, 50) -> (8, 128) bf16.
    w6t = jnp.zeros((OUT_ROWS, PAD), jnp.bfloat16)
    w6t = w6t.at[:OUT_F, :HID].set(w6.T.astype(jnp.bfloat16))
    b6p = jnp.zeros((OUT_ROWS, 1), jnp.float32).at[:OUT_F, 0].set(b6)

    return (wh, w6t, bh, b6p)


@jax.jit
def dnn_forward(x, prepared):
    """x: (B, 90) float32 -> (mean (B,), sigma (B,))."""
    wh_p, w6t_p, bh_p, b6_p = prepared
    B = x.shape[0]

    TB = min(MAX_TB, _round_up(B, 8))     # batch tile (sublane multiple)
    Bp = _round_up(B, TB)
    if Bp != B:
        x = jnp.zeros((Bp, IN_F), x.dtype).at[:B].set(x)

    cost = pl.CostEstimate(
        flops=2 * B * (IN_F * HID + 4 * HID * HID + HID * OUT_F),
        transcendentals=2 * B,
        bytes_accessed=(Bp * IN_F * 4                       # x (f32)
                        + (wh_p.size + w6t_p.size) * 2      # bf16 weights
                        + (bh_p.size + b6_p.size) * 4       # f32 biases
                        + OUT_ROWS * Bp * 4),                # output
    )

    out_t = pl.pallas_call(
        _dnn_kernel,
        out_shape=jax.ShapeDtypeStruct((OUT_ROWS, Bp), jnp.float32),
        grid_spec=pltpu.PrefetchScalarGridSpec(
            num_scalar_prefetch=0,
            grid=(Bp // TB,),
            in_specs=[
                pl.BlockSpec((TB, IN_F), lambda i: (i, 0)),        # x tile
                pl.BlockSpec((5, PAD, PAD), lambda i: (0, 0, 0)),  # packed W1..W5
                pl.BlockSpec((OUT_ROWS, PAD), lambda i: (0, 0)),   # W6^T
                pl.BlockSpec((OUT_ROWS, PAD), lambda i: (0, 0)),   # packed b1..b5
                pl.BlockSpec((OUT_ROWS, 1), lambda i: (0, 0)),     # b6
            ],
            out_specs=pl.BlockSpec((OUT_ROWS, TB), lambda i: (0, i)),
            scratch_shapes=[pltpu.VMEM((TB, PAD), jnp.float32)],   # lane-padded x
        ),
        compiler_params=pltpu.CompilerParams(
            dimension_semantics=("parallel",)),
        cost_estimate=cost,
    )(x, wh_p, w6t_p, bh_p, b6_p)

    mean = out_t[0, :B]
    sigma = out_t[1, :B]
    return mean, sigma


def _reference(x, params, matched):
    """matched=True mirrors kernel precision (bf16 operands, f32 accumulation);
    matched=False is the pure-f32 PyTorch-semantics reference."""
    def mm(a, w):
        if matched:
            return jnp.dot(a.astype(jnp.bfloat16), w.astype(jnp.bfloat16),
                           preferred_element_type=jnp.float32)
        return a @ w

    h = x
    for (w, b) in params[:5]:
        h = jnp.maximum(mm(h, w) + b, 0.0)
    w6, b6 = params[5]
    y = mm(h, w6) + b6
    mean = y[:, 0]
    sigma = jax.nn.softplus(y[:, 1]) + 1e-6
    return mean, sigma


if __name__ == "__main__":
    key = jax.random.PRNGKey(0)
    kx, kp = jax.random.split(key)

    B = 8
    x = jax.random.normal(kx, (B, IN_F), jnp.float32)
    params = init_params(kp)
    prepared = prepare_params(params)

    mean, sigma = dnn_forward(x, prepared)
    jax.block_until_ready((mean, sigma))

    # Tight check vs a precision-matched reference (bf16 operands, f32 acc).
    m_ref, s_ref = _reference(x, params, matched=True)
    assert bool(jnp.allclose(mean, m_ref, atol=1e-4, rtol=1e-4))
    assert bool(jnp.allclose(sigma, s_ref, atol=1e-4, rtol=1e-4))

    # Loose sanity check vs the pure-f32 reference (bf16 rounding drift only).
    m32, s32 = _reference(x, params, matched=False)
    assert bool(jnp.allclose(mean, m32, atol=1e-1, rtol=1e-1))
    assert bool(jnp.allclose(sigma, s32, atol=1e-1, rtol=1e-1))
    assert bool(jnp.all(sigma > 0.0))

    print("KERNEL_OK")
</pallas_src>

<mosaic_0001>
module attributes {stable_mosaic.version = 11 : i64} {
  func.func @_dnn_kernel(%arg0: i32, %arg1: memref<8x90xf32, #tpu.memory_space<vmem>>, %arg2: memref<5x128x128xbf16, #tpu.memory_space<vmem>>, %arg3: memref<8x128xbf16, #tpu.memory_space<vmem>>, %arg4: memref<8x128xf32, #tpu.memory_space<vmem>>, %arg5: memref<8x1xf32, #tpu.memory_space<vmem>>, %arg6: memref<8x8xf32, #tpu.memory_space<vmem>>, %arg7: memref<8x128xf32, #tpu.memory_space<vmem>>) attributes {dimension_semantics = [#tpu.dimension_semantics<parallel>], iteration_bounds = array<i64: 1>, scalar_prefetch = 0 : i64, scratch_operands = 1 : i64, tpu.core_type = #tpu.core_type<tc>, window_params = [{transform_indices = @transform_0, window_bounds = array<i64: 8, 90>}, {pipeline_mode = #tpu.pipeline_mode<synchronous>, transform_indices = @transform_1, window_bounds = array<i64: 5, 128, 128>}, {pipeline_mode = #tpu.pipeline_mode<synchronous>, transform_indices = @transform_2, window_bounds = array<i64: 8, 128>}, {pipeline_mode = #tpu.pipeline_mode<synchronous>, transform_indices = @transform_3, window_bounds = array<i64: 8, 128>}, {pipeline_mode = #tpu.pipeline_mode<synchronous>, transform_indices = @transform_4, window_bounds = array<i64: 8, 1>}, {transform_indices = @transform_5, window_bounds = array<i64: 8, 8>}]} {
    %cst = arith.constant 0.000000e+00 : f32
    %0 = vector.broadcast %cst : f32 to vector<8x128xf32>
    %c0 = arith.constant 0 : index
    %c0_0 = arith.constant 0 : index
    %1 = vector.load %arg7[%c0, %c0_0] : memref<8x128xf32, #tpu.memory_space<vmem>>, vector<8x128xf32>
    tpu.vector_store %arg7[%c0, %c0_0], %0 {strides = array<i32>} : memref<8x128xf32, #tpu.memory_space<vmem>>, vector<8x128xf32>,
    %c0_1 = arith.constant 0 : index
    %c0_2 = arith.constant 0 : index
    %2 = vector.load %arg1[%c0_1, %c0_2] : memref<8x90xf32, #tpu.memory_space<vmem>>, vector<8x90xf32>
    %c0_3 = arith.constant 0 : index
    %c0_4 = arith.constant 0 : index
    %3 = vector.load %arg7[%c0_3, %c0_4] : memref<8x128xf32, #tpu.memory_space<vmem>>, vector<8x90xf32>
    tpu.vector_store %arg7[%c0_3, %c0_4], %2 {strides = array<i32>} : memref<8x128xf32, #tpu.memory_space<vmem>>, vector<8x90xf32>,
    %c0_5 = arith.constant 0 : index
    %c0_6 = arith.constant 0 : index
    %4 = vector.load %arg7[%c0_5, %c0_6] : memref<8x128xf32, #tpu.memory_space<vmem>>, vector<8x128xf32>
    %5 = arith.truncf %4 : vector<8x128xf32> to vector<8x128xbf16>
    %c0_7 = arith.constant 0 : index
    %c0_8 = arith.constant 0 : index
    %c0_9 = arith.constant 0 : index
    %6 = vector.load %arg2[%c0_7, %c0_8, %c0_9] : memref<5x128x128xbf16, #tpu.memory_space<vmem>>, vector<1x128x128xbf16>
    %7 = vector.shape_cast %6 : vector<1x128x128xbf16> to vector<128x128xbf16>
    %cst_10 = arith.constant dense<0.000000e+00> : vector<8x128xf32>
    %8 = tpu.matmul %5, %7, %cst_10 {dimension_numbers = #tpu.dot_dimension_numbers<[1], [0], [0], [1], [0, 0, 1, 1], [], []>} : vector<8x128xbf16>, vector<128x128xbf16>, vector<8x128xf32> -> vector<8x128xf32>
    %c0_11 = arith.constant 0 : index
    %c0_12 = arith.constant 0 : index
    %9 = vector.load %arg4[%c0_11, %c0_12] : memref<8x128xf32, #tpu.memory_space<vmem>>, vector<1x128xf32>
    %10 = vector.broadcast %9 : vector<1x128xf32> to vector<8x128xf32>
    %11 = arith.addf %8, %10 : vector<8x128xf32>
    %cst_13 = arith.constant 0.000000e+00 : f32
    %12 = vector.broadcast %cst_13 : f32 to vector<8x128xf32>
    %13 = arith.maximumf %11, %12 : vector<8x128xf32>
    %14 = arith.truncf %13 : vector<8x128xf32> to vector<8x128xbf16>
    %c1 = arith.constant 1 : index
    %c0_14 = arith.constant 0 : index
    %c0_15 = arith.constant 0 : index
    %15 = vector.load %arg2[%c1, %c0_14, %c0_15] : memref<5x128x128xbf16, #tpu.memory_space<vmem>>, vector<1x128x128xbf16>
    %16 = vector.shape_cast %15 : vector<1x128x128xbf16> to vector<128x128xbf16>
    %cst_16 = arith.constant dense<0.000000e+00> : vector<8x128xf32>
    %17 = tpu.matmul %14, %16, %cst_16 {dimension_numbers = #tpu.dot_dimension_numbers<[1], [0], [0], [1], [0, 0, 1, 1], [], []>} : vector<8x128xbf16>, vector<128x128xbf16>, vector<8x128xf32> -> vector<8x128xf32>
    %c1_17 = arith.constant 1 : index
    %c0_18 = arith.constant 0 : index
    %18 = vector.load %arg4[%c1_17, %c0_18] : memref<8x128xf32, #tpu.memory_space<vmem>>, vector<1x128xf32>
    %19 = vector.broadcast %18 : vector<1x128xf32> to vector<8x128xf32>
    %20 = arith.addf %17, %19 : vector<8x128xf32>
    %cst_19 = arith.constant 0.000000e+00 : f32
    %21 = vector.broadcast %cst_19 : f32 to vector<8x128xf32>
    %22 = arith.maximumf %20, %21 : vector<8x128xf32>
    %23 = arith.truncf %22 : vector<8x128xf32> to vector<8x128xbf16>
    %c2 = arith.constant 2 : index
    %c0_20 = arith.constant 0 : index
    %c0_21 = arith.constant 0 : index
    %24 = vector.load %arg2[%c2, %c0_20, %c0_21] : memref<5x128x128xbf16, #tpu.memory_space<vmem>>, vector<1x128x128xbf16>
    %25 = vector.shape_cast %24 : vector<1x128x128xbf16> to vector<128x128xbf16>
    %cst_22 = arith.constant dense<0.000000e+00> : vector<8x128xf32>
    %26 = tpu.matmul %23, %25, %cst_22 {dimension_numbers = #tpu.dot_dimension_numbers<[1], [0], [0], [1], [0, 0, 1, 1], [], []>} : vector<8x128xbf16>, vector<128x128xbf16>, vector<8x128xf32> -> vector<8x128xf32>
    %c2_23 = arith.constant 2 : index
    %c0_24 = arith.constant 0 : index
    %27 = vector.load %arg4[%c2_23, %c0_24] : memref<8x128xf32, #tpu.memory_space<vmem>>, vector<1x128xf32>
    %28 = vector.broadcast %27 : vector<1x128xf32> to vector<8x128xf32>
    %29 = arith.addf %26, %28 : vector<8x128xf32>
    %cst_25 = arith.constant 0.000000e+00 : f32
    %30 = vector.broadcast %cst_25 : f32 to vector<8x128xf32>
    %31 = arith.maximumf %29, %30 : vector<8x128xf32>
    %32 = arith.truncf %31 : vector<8x128xf32> to vector<8x128xbf16>
    %c3 = arith.constant 3 : index
    %c0_26 = arith.constant 0 : index
    %c0_27 = arith.constant 0 : index
    %33 = vector.load %arg2[%c3, %c0_26, %c0_27] : memref<5x128x128xbf16, #tpu.memory_space<vmem>>, vector<1x128x128xbf16>
    %34 = vector.shape_cast %33 : vector<1x128x128xbf16> to vector<128x128xbf16>
    %cst_28 = arith.constant dense<0.000000e+00> : vector<8x128xf32>
    %35 = tpu.matmul %32, %34, %cst_28 {dimension_numbers = #tpu.dot_dimension_numbers<[1], [0], [0], [1], [0, 0, 1, 1], [], []>} : vector<8x128xbf16>, vector<128x128xbf16>, vector<8x128xf32> -> vector<8x128xf32>
    %c3_29 = arith.constant 3 : index
    %c0_30 = arith.constant 0 : index
    %36 = vector.load %arg4[%c3_29, %c0_30] : memref<8x128xf32, #tpu.memory_space<vmem>>, vector<1x128xf32>
    %37 = vector.broadcast %36 : vector<1x128xf32> to vector<8x128xf32>
    %38 = arith.addf %35, %37 : vector<8x128xf32>
    %cst_31 = arith.constant 0.000000e+00 : f32
    %39 = vector.broadcast %cst_31 : f32 to vector<8x128xf32>
    %40 = arith.maximumf %38, %39 : vector<8x128xf32>
    %41 = arith.truncf %40 : vector<8x128xf32> to vector<8x128xbf16>
    %c4 = arith.constant 4 : index
    %c0_32 = arith.constant 0 : index
    %c0_33 = arith.constant 0 : index
    %42 = vector.load %arg2[%c4, %c0_32, %c0_33] : memref<5x128x128xbf16, #tpu.memory_space<vmem>>, vector<1x128x128xbf16>
    %43 = vector.shape_cast %42 : vector<1x128x128xbf16> to vector<128x128xbf16>
    %cst_34 = arith.constant dense<0.000000e+00> : vector<8x128xf32>
    %44 = tpu.matmul %41, %43, %cst_34 {dimension_numbers = #tpu.dot_dimension_numbers<[1], [0], [0], [1], [0, 0, 1, 1], [], []>} : vector<8x128xbf16>, vector<128x128xbf16>, vector<8x128xf32> -> vector<8x128xf32>
    %c4_35 = arith.constant 4 : index
    %c0_36 = arith.constant 0 : index
    %45 = vector.load %arg4[%c4_35, %c0_36] : memref<8x128xf32, #tpu.memory_space<vmem>>, vector<1x128xf32>
    %46 = vector.broadcast %45 : vector<1x128xf32> to vector<8x128xf32>
    %47 = arith.addf %44, %46 : vector<8x128xf32>
    %cst_37 = arith.constant 0.000000e+00 : f32
    %48 = vector.broadcast %cst_37 : f32 to vector<8x128xf32>
    %49 = arith.maximumf %47, %48 : vector<8x128xf32>
    %50 = arith.truncf %49 : vector<8x128xf32> to vector<8x128xbf16>
    %c0_38 = arith.constant 0 : index
    %c0_39 = arith.constant 0 : index
    %51 = vector.load %arg3[%c0_38, %c0_39] : memref<8x128xbf16, #tpu.memory_space<vmem>>, vector<8x128xbf16>
    %cst_40 = arith.constant dense<0.000000e+00> : vector<8x8xf32>
    %52 = tpu.matmul %51, %50, %cst_40 {dimension_numbers = #tpu.dot_dimension_numbers<[1], [1], [0], [0], [0, 0, 1, 0], [], []>} : vector<8x128xbf16>, vector<8x128xbf16>, vector<8x8xf32> -> vector<8x8xf32>
    %c0_41 = arith.constant 0 : index
    %c0_42 = arith.constant 0 : index
    %53 = vector.load %arg5[%c0_41, %c0_42] : memref<8x1xf32, #tpu.memory_space<vmem>>, vector<8x1xf32>
    %54 = vector.broadcast %53 : vector<8x1xf32> to vector<8x8xf32>
    %55 = arith.addf %52, %54 : vector<8x8xf32>
    %cst_43 = arith.constant 0.000000e+00 : f32
    %56 = vector.broadcast %cst_43 : f32 to vector<8x8xf32>
    %57 = arith.maximumf %55, %56 : vector<8x8xf32>
    %58 = math.absf %55 : vector<8x8xf32>
    %cst_44 = arith.constant 0.000000e+00 : f32
    %59 = vector.broadcast %cst_44 : f32 to vector<8x8xf32>
    %60 = arith.subf %59, %58 : vector<8x8xf32>
    %61 = math.exp %60 : vector<8x8xf32>
    %62 = math.log1p %61 : vector<8x8xf32>
    %63 = arith.addf %57, %62 : vector<8x8xf32>
    %cst_45 = arith.constant 9.99999997E-7 : f32
    %64 = vector.broadcast %cst_45 : f32 to vector<8x8xf32>
    %65 = arith.addf %63, %64 : vector<8x8xf32>
    %66 = tpu.iota {dimensions = array<i32: 0>} : vector<8x8xi32>
    %c1_i32 = arith.constant 1 : i32
    %67 = vector.broadcast %c1_i32 : i32 to vector<8x8xi32>
    %68 = arith.cmpi eq, %66, %67 : vector<8x8xi32>
    %69 = arith.select %68, %65, %55 : vector<8x8xi1>, vector<8x8xf32>
    %c0_46 = arith.constant 0 : index
    %c0_47 = arith.constant 0 : index
    %70 = vector.load %arg6[%c0_46, %c0_47] : memref<8x8xf32, #tpu.memory_space<vmem>>, vector<8x8xf32>
    tpu.vector_store %arg6[%c0_46, %c0_47], %69 {strides = array<i32>} : memref<8x8xf32, #tpu.memory_space<vmem>>, vector<8x8xf32>,
    return
  }
  func.func @transform_0(%arg0: i32) -> (i32, i32) {
    %c0_i32 = arith.constant 0 : i32
    %c0_i32_0 = arith.constant 0 : i32
    return %arg0, %c0_i32 : i32, i32
  }
  func.func @transform_1(%arg0: i32) -> (i32, i32, i32) {
    %c0_i32 = arith.constant 0 : i32
    %c0_i32_0 = arith.constant 0 : i32
    %c0_i32_1 = arith.constant 0 : i32
    %c0_i32_2 = arith.constant 0 : i32
    return %c0_i32, %c0_i32_0, %c0_i32_1 : i32, i32, i32
  }
  func.func @transform_2(%arg0: i32) -> (i32, i32) {
    %c0_i32 = arith.constant 0 : i32
    %c0_i32_0 = arith.constant 0 : i32
    %c0_i32_1 = arith.constant 0 : i32
    return %c0_i32, %c0_i32_0 : i32, i32
  }
  func.func @transform_3(%arg0: i32) -> (i32, i32) {
    %c0_i32 = arith.constant 0 : i32
    %c0_i32_0 = arith.constant 0 : i32
    %c0_i32_1 = arith.constant 0 : i32
    return %c0_i32, %c0_i32_0 : i32, i32
  }
  func.func @transform_4(%arg0: i32) -> (i32, i32) {
    %c0_i32 = arith.constant 0 : i32
    %c0_i32_0 = arith.constant 0 : i32
    %c0_i32_1 = arith.constant 0 : i32
    return %c0_i32, %c0_i32_0 : i32, i32
  }
  func.func @transform_5(%arg0: i32) -> (i32, i32) {
    %c0_i32 = arith.constant 0 : i32
    %c0_i32_0 = arith.constant 0 : i32
    return %c0_i32, %arg0 : i32, i32
  }
}

</mosaic_0001>

<bundles_post_ra>
// kernel: dnn_forward.1
= control target key start
LH: loop header
LB: loop body
LE: loop exit
PB: predicated region body
PF: predicated region fallthrough
CT: control target
= control target key end

     0   :  { %10 = vsyncpa [#allocation4], 0  ;;  %s1124_s0 = inlined_call_operand.vmem [shape: f32[8,90], index: 0, kind: input, shape index: {}]   ;;  %s1125_s1 = inlined_call_operand.hbm [shape: bf16[5,128,128], index: 1, kind: input, shape index: {}]   ;;  %s1126_s2 = inlined_call_operand.hbm [shape: bf16[8,128], index: 2, kind: input, shape index: {}]   ;;  %s1127_s3 = inlined_call_operand.vmem [shape: f32[8,128], index: 3, kind: input, shape index: {}]   ;;  %s1128_s4 = inlined_call_operand.vmem [shape: f32[8,1], index: 4, kind: input, shape index: {}]   ;;  %s1129_s5 = inlined_call_operand.vmem [shape: f32[8,8], index: 5, kind: output, shape index: {}]  }
   0x1   :  { %11 = vsyncpa [#allocation6], 0  ;;  %s985_s18 = smov [#allocation3]   ;;  %s937_s22 = scalar_lea.hbm %s1125_s1, 5120 }
   0x2   :  { %s19_s19 = sshll.u32 %s985_s18, 4  ;;  %p938_p0 = scmp.ne.s32.totalorder %s1125_s1, %s937_s22  ;;  %s20_s19 = int_to_ptr.vmem [resolvable:$true] %s19_s19 }
   0x3   :  { %p941_p1 = scmp.lt.u32.totalorder %s937_s22, %s1125_s1 }
   0x5   :  { %p943_p2 = pnand %p941_p1, %p938_p0 }
   0x7   :  { %946 = shalt.err (!%p943_p2)
}
   0x8   :  { %s947_s27 = scalar_lea.vmem %s20_s19, 5120  ;;  %p952_p4 = scmp.lt.s32.totalorder %s20_s19, %s20_s19 }
   0x9   :  { %p948_p3 = scmp.ne.s32.totalorder %s20_s19, %s947_s27  ;;  %p953_p5 = scmp.lt.s32.totalorder %s947_s27, %s947_s27 }
   0xb   :  { %p954_p6 = por %p953_p5, %p952_p4 }
   0xd   :  { %p955_p7 = pnand %p954_p6, %p948_p3 }
   0xf   :  { %958 = shalt.err (!%p955_p7)
}
  0x10   :  { %s986_s28 = smov 64   ;;  %s987_s29 = smov 4  }
  0x11   :  { %25 = dma.hbm_to_vmem [thread:$0]  %s1125_s1, 5120, %s20_s19, [#allocation4], %s986_s28, %s986_s28, %s987_s29  }
  0x12   :  { %s988_s7 = smov [#allocation5]   ;;  %s959_s11 = scalar_lea.hbm %s1126_s2, 64 }
  0x13   :  { %s32_s8 = sshll.u32 %s988_s7, 4  ;;  %p960_p8 = scmp.ne.s32.totalorder %s1126_s2, %s959_s11  ;;  %s33_s8 = int_to_ptr.vmem [resolvable:$true] %s32_s8 }
  0x14   :  { %p963_p9 = scmp.lt.u32.totalorder %s959_s11, %s1126_s2 }
  0x16   :  { %p965_p10 = pnand %p963_p9, %p960_p8 }
  0x18   :  { %968 = shalt.err (!%p965_p10)
}
  0x19   :  { %s969_s16 = scalar_lea.vmem %s33_s8, 64  ;;  %p974_p12 = scmp.lt.s32.totalorder %s33_s8, %s33_s8 }
  0x1a   :  { %p970_p11 = scmp.ne.s32.totalorder %s33_s8, %s969_s16  ;;  %p975_p13 = scmp.lt.s32.totalorder %s969_s16, %s969_s16 }
  0x1c   :  { %p976_p0 = por %p975_p13, %p974_p12 }
  0x1e   :  { %p977_p1 = pnand %p976_p0, %p970_p11 }
  0x20   :  { %980 = shalt.err (!%p977_p1)
}
  0x21   :  { %35 = dma.hbm_to_vmem [thread:$0]  %s1126_s2, 64, %s33_s8, [#allocation6]  }
  0x22   :  { %981 = dma.done.wait [#allocation4], 5120  }
  0x23   :  { %982 = vsyncadd [#allocation4], 4294962176 }
  0x24   :  { %983 = dma.done.wait [#allocation6], 64  }
  0x25   :  { %984 = vsyncadd [#allocation6], 4294967232  ;;  %v989_v0 = vmov 0.0   ;;  %vm990_vm0 = vmmov 0   ;;  %v893_v1 = vld [vmem:[#allocation3] sm:$0xff]   ;;  %v894_v2 = vld [vmem:[#allocation3 + $0x8] sm:$0xff]  }
  0x26   :  { %779 = vmatprep.subr.bf16.mxu0 %v989_v0  ;;  %47 = vst [vmem:[#allocation2] sm:$0xff] %v989_v0  ;;  %795 = vmatprep.mubr.msk.bf16.mxu0 %vm990_vm0, %v989_v0  ;;  %v895_v3 = vld [vmem:[#allocation3 + $0x10] sm:$0xff]   ;;  %vm49_vm1 = vcmask 736256   ;;  %v48_v4 = vld [vmem:[%s1124_s0] sm:$0xff]  ;;  %v901_v5 = vld [vmem:[#allocation3 + $0x40] sm:$0xff]   ;;  %vm679_vm4 = vcmask 64512  }
  0x27   :  { %799 = vmatprep.subr.bf16.mxu1 %v989_v0  ;;  %815 = vmatprep.mubr.msk.bf16.mxu1 %vm990_vm0, %v989_v0  ;;  %50 = vst.msk [vmem:[#allocation2] sm:$0xff] %vm49_vm1, %v48_v4  ;;  %v896_v6 = vld [vmem:[#allocation3 + $0x18] sm:$0xff]   ;;  %v902_v7 = vld [vmem:[#allocation3 + $0x48] sm:$0xff]   ;;  %v897_v8 = vld [vmem:[#allocation3 + $0x20] sm:$0xff]  }
  0x28   :  { %780 = vmatpush3.bf16.msra.mxu0 %v893_v1  ;;  %800 = vmatpush3.bf16.msra.mxu1 %v901_v5  ;;  %v903_v9 = vld [vmem:[#allocation3 + $0x50] sm:$0xff]   ;;  %v898_v10 = vld [vmem:[#allocation3 + $0x28] sm:$0xff]   ;;  %v904_v11 = vld [vmem:[#allocation3 + $0x58] sm:$0xff]  }
  0x29   :  { %781 = vmatprep.subr.bf16.mxu0 %v989_v0  ;;  %801 = vmatprep.subr.bf16.mxu1 %v989_v0  ;;  %v899_v12 = vld [vmem:[#allocation3 + $0x30] sm:$0xff]   ;;  %v905_v13 = vld [vmem:[#allocation3 + $0x60] sm:$0xff]   ;;  %v900_v14 = vld [vmem:[#allocation3 + $0x38] sm:$0xff]  }
  0x2a   :  { %v906_v16 = vld [vmem:[#allocation3 + $0x68] sm:$0xff]   ;;  %v907_v18 = vld [vmem:[#allocation3 + $0x70] sm:$0xff]   ;;  %v908_v19 = vld [vmem:[#allocation3 + $0x78] sm:$0xff]  }
  0x2b   :  { %v909_v20 = vld [vmem:[#allocation3 + $0x80] sm:$0xff]   ;;  %v910_v21 = vld [vmem:[#allocation3 + $0x88] sm:$0xff]   ;;  %v911_v22 = vld [vmem:[#allocation3 + $0x90] sm:$0xff]  }
  0x2c   :  { %782 = vmatpush3.bf16.msra.mxu0 %v894_v2  ;;  %802 = vmatpush3.bf16.msra.mxu1 %v902_v7  ;;  %v912_v23 = vld [vmem:[#allocation3 + $0x98] sm:$0xff]   ;;  %v913_v24 = vld [vmem:[#allocation3 + $0xa0] sm:$0xff]   ;;  %v914_v25 = vld [vmem:[#allocation3 + $0xa8] sm:$0xff]  }
  0x2d   :  { %783 = vmatprep.subr.bf16.mxu0 %v989_v0  ;;  %803 = vmatprep.subr.bf16.mxu1 %v989_v0  ;;  %v687_v26 = vld [vmem:[%s1127_s3] ss:$0 sm:$0xff]  ;;  %v915_v34 = vld [vmem:[#allocation3 + $0xb0] sm:$0xff]   ;;  %v917_v36 = vld [vmem:[#allocation3 + $0xc0] sm:$0xff]  }
  0x2e   :  { %v51_v15 = vld [vmem:[#allocation2] sm:$0xff]  ;;  %v918_v37 = vld [vmem:[#allocation3 + $0xc8] sm:$0xff]   ;;  %v919_v38 = vld [vmem:[#allocation3 + $0xd0] sm:$0xff]  }
  0x2f   :  { %v52_v17 = vpack.c.bf16 %v51_v15, %v51_v15  ;;  %v916_v35 = vld [vmem:[#allocation3 + $0xb8] sm:$0xff]   ;;  %v921_v40 = vld [vmem:[#allocation3 + $0xe0] sm:$0xff]   ;;  %v922_v41 = vld [vmem:[#allocation3 + $0xe8] sm:$0xff]  }
  0x30   :  { %784 = vmatpush3.bf16.msra.mxu0 %v895_v3  ;;  %804 = vmatpush3.bf16.msra.mxu1 %v903_v9  ;;  %v920_v39 = vld [vmem:[#allocation3 + $0xd8] sm:$0xff]   ;;  %v923_v50 = vld [vmem:[#allocation3 + $0xf0] sm:$0xff]   ;;  %v925_v52 = vld [vmem:[#allocation3 + $0x100] sm:$0xff]  }
  0x31   :  { %785 = vmatprep.subr.bf16.mxu0 %v989_v0  ;;  %805 = vmatprep.subr.bf16.mxu1 %v989_v0  ;;  %v696_v42 = vld [vmem:[%s1127_s3 + $0x1] ss:$0 sm:$0xff]  ;;  %v926_v53 = vld [vmem:[#allocation3 + $0x108] sm:$0xff]   ;;  %v927_v54 = vld [vmem:[#allocation3 + $0x110] sm:$0xff]  }
  0x32   :  { %v924_v51 = vld [vmem:[#allocation3 + $0xf8] sm:$0xff]   ;;  %v929_v56 = vld [vmem:[#allocation3 + $0x120] sm:$0xff]   ;;  %v930_v57 = vld [vmem:[#allocation3 + $0x128] sm:$0xff]  }
  0x33   :  { %v928_v55 = vld [vmem:[#allocation3 + $0x118] sm:$0xff]   ;;  %v931_v3 = vld [vmem:[#allocation3 + $0x130] sm:$0xff]  }
  0x34   :  { %786 = vmatpush3.bf16.msra.mxu0 %v896_v6  ;;  %806 = vmatpush3.bf16.msra.mxu1 %v904_v11  ;;  %v705_v58 = vld [vmem:[%s1127_s3 + $0x2] ss:$0 sm:$0xff]  ;;  %v714_v5 = vld [vmem:[%s1127_s3 + $0x3] ss:$0 sm:$0xff] }
  0x35   :  { %787 = vmatprep.subr.bf16.mxu0 %v989_v0  ;;  %807 = vmatprep.subr.bf16.mxu1 %v989_v0  ;;  %v932_v4 = vld [vmem:[#allocation3 + $0x138] sm:$0xff]  }
  0x38   :  { %788 = vmatpush3.bf16.msra.mxu0 %v897_v8  ;;  %808 = vmatpush3.bf16.msra.mxu1 %v905_v13  ;;  %v613_v13 = vld [vmem:[%s1128_s4] sm:$0xff] }
  0x39   :  { %789 = vmatprep.subr.bf16.mxu0 %v989_v0  ;;  %809 = vmatprep.subr.bf16.mxu1 %v989_v0 }
  0x3c   :  { %790 = vmatpush3.bf16.msra.mxu0 %v898_v10  ;;  %810 = vmatpush3.bf16.msra.mxu1 %v906_v16 }
  0x3d   :  { %791 = vmatprep.subr.bf16.mxu0 %v989_v0  ;;  %811 = vmatprep.subr.bf16.mxu1 %v989_v0 }
  0x40   :  { %792 = vmatpush3.bf16.msra.mxu0 %v899_v12  ;;  %812 = vmatpush3.bf16.msra.mxu1 %v907_v18 }
  0x41   :  { %793 = vmatprep.subr.bf16.mxu0 %v989_v0  ;;  %813 = vmatprep.subr.bf16.mxu1 %v989_v0 }
  0x44   :  { %794 = vmatpush3.bf16.msra.mxu0 %v900_v14  ;;  %814 = vmatpush3.bf16.msra.mxu1 %v908_v19  ;;  %v991_v14 = vmov 0  }
  0x45   :  { %819 = vmatprep.subr.bf16.mxu0 %v989_v0  ;;  %839 = vmatprep.subr.bf16.mxu1 %v989_v0 }
  0x46   :  { %892 = vset.pattern.permute.xlu0 %v991_v14 }
  0x47   :  { %796 = vmatmul.mubr.bf16.vlgmr.msra.gmra.mrb[0].mxu0 %v52_v17  ;;  %616 = vperm.xlu0 %892, %v613_v13  }
  0x48   :  { %835 = vmatprep.mubr.msk.bf16.mxu0 %vm990_vm0, %v989_v0  ;;  %820 = vmatpush3.bf16.msra.mxu0 %v909_v20 }
  0x49   :  { %821 = vmatprep.subr.bf16.mxu0 %v989_v0 }
  0x4c   :  { %822 = vmatpush3.bf16.msra.mxu0 %v910_v21 }
  0x4d   :  { %823 = vmatprep.subr.bf16.mxu0 %v989_v0 }
  0x50   :  { %824 = vmatpush3.bf16.msra.mxu0 %v911_v22  ;;  %v612_v22 = vld [vmem:[#allocation5] sm:$0xf] }
  0x51   :  { %825 = vmatprep.subr.bf16.mxu0 %v989_v0 }
  0x54   :  { %826 = vmatpush3.bf16.msra.mxu0 %v912_v23 }
  0x55   :  { %827 = vmatprep.subr.bf16.mxu0 %v989_v0 }
  0x58   :  { %828 = vmatpush3.bf16.msra.mxu0 %v913_v24 }
  0x59   :  { %829 = vmatprep.subr.bf16.mxu0 %v989_v0 }
  0x5c   :  { %830 = vmatpush3.bf16.msra.mxu0 %v914_v25 }
  0x5d   :  { %831 = vmatprep.subr.bf16.mxu0 %v989_v0 }
  0x60   :  { %832 = vmatpush3.bf16.msra.mxu0 %v915_v34 }
  0x61   :  { %833 = vmatprep.subr.bf16.mxu0 %v989_v0 }
  0x64   :  { %834 = vmatpush3.bf16.msra.mxu0 %v916_v35 }
  0x65   :  { %859 = vmatprep.subr.bf16.mxu0 %v989_v0 }
  0xc6   :  { %v617_v23 = vpop.permute.xlu0 %616 }
 0x11a   :  { %v156_v27 = vpop.f32.mrb[0].mxu0 }
 0x11b   :  { %v157_v28 = vadd.f32 %v687_v26, %v156_v27  ;;  %v797_v29 = vpop.f32.mrb[1].mxu0 }
 0x11c   :  { %v159_v30 = vpop.f32.mrb[2].mxu0 }
 0x11d   :  { %v162_v31 = vmax.f32 %v157_v28, 0.0  ;;  %v798_v32 = vpop.f32.mrb[3].mxu0 }
 0x11f   :  { %v163_v33 = vpack.c.bf16 %v162_v31, %v162_v31 }
 0x121   :  { %816 = vmatmul.mubr.bf16.vlgmr.msra.gmra.mrb[0].mxu1 %v163_v33 }
 0x122   :  { %855 = vmatprep.mubr.msk.bf16.mxu1 %vm990_vm0, %v989_v0  ;;  %840 = vmatpush3.bf16.msra.mxu1 %v917_v36  ;;  %v675_v36 = vlaneseq }
 0x123   :  { %841 = vmatprep.subr.bf16.mxu1 %v989_v0 }
 0x126   :  { %842 = vmatpush3.bf16.msra.mxu1 %v918_v37 }
 0x127   :  { %843 = vmatprep.subr.bf16.mxu1 %v989_v0 }
 0x12a   :  { %844 = vmatpush3.bf16.msra.mxu1 %v919_v38 }
 0x12b   :  { %845 = vmatprep.subr.bf16.mxu1 %v989_v0 }
 0x12e   :  { %846 = vmatpush3.bf16.msra.mxu1 %v920_v39 }
 0x12f   :  { %847 = vmatprep.subr.bf16.mxu1 %v989_v0 }
 0x132   :  { %848 = vmatpush3.bf16.msra.mxu1 %v921_v40 }
 0x133   :  { %849 = vmatprep.subr.bf16.mxu1 %v989_v0 }
 0x136   :  { %850 = vmatpush3.bf16.msra.mxu1 %v922_v41  ;;  %v676_v41 = vshrl.u32 %v675_v36, 7 }
 0x137   :  { %851 = vmatprep.subr.bf16.mxu1 %v989_v0 }
 0x138   :  { %vm677_vm3 = vcmp.eq.s32.totalorder %v676_v41, 1 }
 0x13a   :  { %852 = vmatpush3.bf16.msra.mxu1 %v923_v50 }
 0x13b   :  { %853 = vmatprep.subr.bf16.mxu1 %v989_v0 }
 0x13e   :  { %854 = vmatpush3.bf16.msra.mxu1 %v924_v51 }
 0x13f   :  { %879 = vmatprep.subr.bf16.mxu1 %v989_v0 }
 0x1f4   :  { %v268_v43 = vpop.f32.mrb[0].mxu1 }
 0x1f5   :  { %v269_v44 = vadd.f32 %v696_v42, %v268_v43  ;;  %v817_v45 = vpop.f32.mrb[1].mxu1 }
 0x1f6   :  { %v271_v46 = vpop.f32.mrb[2].mxu1 }
 0x1f7   :  { %v274_v47 = vmax.f32 %v269_v44, 0.0  ;;  %v818_v48 = vpop.f32.mrb[3].mxu1 }
 0x1f9   :  { %v275_v49 = vpack.c.bf16 %v274_v47, %v274_v47 }
 0x1fb   :  { %836 = vmatmul.mubr.bf16.vlgmr.msra.gmra.mrb[4].mxu0 %v275_v49 }
 0x1fc   :  { %875 = vmatprep.mubr.msk.bf16.mxu0 %vm990_vm0, %v989_v0  ;;  %860 = vmatpush3.bf16.msra.mxu0 %v925_v52 }
 0x1fd   :  { %861 = vmatprep.subr.bf16.mxu0 %v989_v0 }
 0x200   :  { %862 = vmatpush3.bf16.msra.mxu0 %v926_v53 }
 0x201   :  { %863 = vmatprep.subr.bf16.mxu0 %v989_v0 }
 0x204   :  { %864 = vmatpush3.bf16.msra.mxu0 %v927_v54 }
 0x205   :  { %865 = vmatprep.subr.bf16.mxu0 %v989_v0 }
 0x208   :  { %866 = vmatpush3.bf16.msra.mxu0 %v928_v55 }
 0x209   :  { %867 = vmatprep.subr.bf16.mxu0 %v989_v0 }
 0x20c   :  { %868 = vmatpush3.bf16.msra.mxu0 %v929_v56 }
 0x20d   :  { %869 = vmatprep.subr.bf16.mxu0 %v989_v0 }
 0x210   :  { %870 = vmatpush3.bf16.msra.mxu0 %v930_v57 }
 0x211   :  { %871 = vmatprep.subr.bf16.mxu0 %v989_v0 }
 0x214   :  { %872 = vmatpush3.bf16.msra.mxu0 %v931_v3 }
 0x215   :  { %873 = vmatprep.subr.bf16.mxu0 %v989_v0 }
 0x218   :  { %874 = vmatpush3.bf16.msra.mxu0 %v932_v4 }
 0x2ce   :  { %v380_v59 = vpop.f32.mrb[4].mxu0 }
 0x2cf   :  { %v381_v60 = vadd.f32 %v705_v58, %v380_v59  ;;  %v837_v61 = vpop.f32.mrb[5].mxu0 }
 0x2d0   :  { %v383_v62 = vpop.f32.mrb[6].mxu0 }
 0x2d1   :  { %v386_v63 = vmax.f32 %v381_v60, 0.0  ;;  %v838_v1 = vpop.f32.mrb[7].mxu0 }
 0x2d3   :  { %v387_v2 = vpack.c.bf16 %v386_v63, %v386_v63 }
 0x2d5   :  { %856 = vmatmul.mubr.bf16.vlgmr.msra.gmra.mrb[4].mxu1 %v387_v2 }
 0x2d6   :  { %881 = vmatprep.mubr.msk.bf16.mxu1 %vm990_vm0, %v989_v0  ;;  %v723_v0 = vld [vmem:[%s1127_s3 + $0x4] ss:$0 sm:$0xff] }
 0x3a8   :  { %v492_v6 = vpop.f32.mrb[4].mxu1 }
 0x3a9   :  { %v493_v7 = vadd.f32 %v714_v5, %v492_v6  ;;  %v857_v8 = vpop.f32.mrb[5].mxu1 }
 0x3aa   :  { %v495_v9 = vpop.f32.mrb[6].mxu1 }
 0x3ab   :  { %v498_v10 = vmax.f32 %v493_v7, 0.0  ;;  %v858_v11 = vpop.f32.mrb[7].mxu1 }
 0x3ad   :  { %v499_v12 = vpack.c.bf16 %v498_v10, %v498_v10 }
 0x3af   :  { %876 = vmatmul.mubr.bf16.vlgmr.msra.gmra.mrb[8].mxu0 %v499_v12 }
 0x482   :  { %v604_v15 = vpop.f32.mrb[8].mxu0 }
 0x483   :  { %v605_v16 = vadd.f32 %v723_v0, %v604_v15  ;;  %v877_v17 = vpop.f32.mrb[9].mxu0 }
 0x484   :  { %v607_v18 = vpop.f32.mrb[10].mxu0 }
 0x485   :  { %v610_v19 = vmax.f32 %v605_v16, 0.0  ;;  %v878_v20 = vpop.f32.mrb[11].mxu0 }
 0x487   :  { %v611_v21 = vpack.c.bf16 %v610_v19, %v610_v19 }
 0x489   :  { %880 = vmatpush3.bf16.xpose.msra.mxu1 %v611_v21 }
 0x490   :  { %882 = vmatmul.mubr.bf16.vlgmr.msra.gmra.mrb[8].mxu1 %v612_v22 }
 0x563   :  { %v653_v24 = vpop.f32.mrb[8].mxu1 }
 0x564   :  { %v654_v25 = vadd.f32 %v653_v24, %v617_v23  ;;  %v883_v26 = vpop.f32.mrb[9].mxu1 }
 0x565   :  { %v656_v27 = vpop.f32.mrb[10].mxu1 }
 0x566   :  { %v660_v28 = vand.u32 2147483647, %v654_v25  ;;  %v884_v29 = vpop.f32.mrb[11].mxu1  ;;  %v659_v42 = vmax.f32 %v654_v25, 0.0 }
 0x568   :  { %v661_v30 = vsub.f32 0.0, %v660_v28 }
 0x56a   :  { %v662_v31 = vmul.f32 1.442695, %v661_v30 }
 0x56c   :  { %933 = vpow2.f32 %v662_v31 }
 0x576   :  { %v934_v32 = vpop.eup %933 }
 0x577   :  { %v664_v33 = vadd.f32 1.0, %v934_v32  ;;  %v667_v34 = vmul.f32 -0.5, %v934_v32  ;;  %v670_v37 = vand.u32 2147483647, %v934_v32 }
 0x579   :  { %935 = vlog2.f32 %v664_v33  ;;  %v668_v35 = vadd.f32 1.0, %v667_v34  ;;  %vm671_vm2 = vcmp.lt.f32.partialorder %v670_v37, 0.0004427343 }
 0x57b   :  { %v669_v40 = vmul.f32 %v934_v32, %v668_v35 }
 0x583   :  { %v936_v38 = vpop.eup %935 }
 0x584   :  { %v666_v39 = vmul.f32 0.6931472, %v936_v38 }
 0x586   :  { %v672_v43 = vsel %vm671_vm2, %v669_v40, %v666_v39 }
 0x587   :  { %v673_v44 = vadd.f32 %v672_v43, %v659_v42 }
 0x589   :  { %v674_v45 = vadd.f32 1e-06, %v673_v44 }
 0x58b   :  { %v678_v46 = vsel %vm677_vm3, %v674_v45, %v654_v25 }
 0x58c   :  { %680 = vst.msk [vmem:[%s1129_s5] sm:$0xff] %vm679_vm4, %v678_v46 }
 0x58d   :  { %685 = vsyncpa [#allocation4], 1 }
 0x58e   :  { %686 = vsyncpa [#allocation6], 1 }

</bundles_post_ra>
